<compile_context>
chip_gen: v6e
topology: v6e:2x2x1
jax: 0.10.0
libtpu: 0.0.40
codegen_flags: <defaults>
</compile_context>

<pallas_src>
import math
from functools import partial

import jax
import jax.numpy as jnp
from jax.experimental import pallas as pl
from jax.experimental.pallas import tpu as pltpu


def _to_2tuple(v):
    return tuple(v) if isinstance(v, (tuple, list)) else (v, v)


def _get_pad_shape(input_hw, kernel_size, stride, dilation):
    input_h, input_w = input_hw
    kernel_h, kernel_w = kernel_size
    stride_h, stride_w = stride
    dil_h, dil_w = dilation
    output_h = math.ceil(input_h / stride_h)
    output_w = math.ceil(input_w / stride_w)
    pad_h = max((output_h - 1) * stride_h + (kernel_h - 1) * dil_h + 1 - input_h, 0)
    pad_w = max((output_w - 1) * stride_w + (kernel_w - 1) * dil_w + 1 - input_w, 0)
    return pad_h, pad_w


def _tiled_plane_bytes(h, w, itemsize):
    """VMEM footprint of one (h, w) plane after (sublane, lane) tiling."""
    packing = max(1, 4 // itemsize)          # sub-32-bit dtypes pack sublanes
    sub = 8 * packing
    h_pad = pl.cdiv(h, sub) * sub
    w_pad = pl.cdiv(w, 128) * 128
    return h_pad * w_pad * itemsize


def _pad_kernel(x_ref, o_ref, *, pads):
    # x_ref: (P, in_h, in_w), o_ref: (P, out_h, out_w).
    # Static pads -> padded tile built in registers, ONE full-tile store.
    o_ref[...] = jnp.pad(x_ref[...], pads)


def adaptive_padding(x, kernel_size=1, stride=1, dilation=1, padding="corner"):
    """Pallas implementation of AdaptivePadding.forward for NCHW inputs."""
    assert padding in ("same", "corner")
    kernel_size = _to_2tuple(kernel_size)
    stride = _to_2tuple(stride)
    dilation = _to_2tuple(dilation)

    n, c, in_h, in_w = x.shape
    pad_h, pad_w = _get_pad_shape((in_h, in_w), kernel_size, stride, dilation)

    if pad_h == 0 and pad_w == 0:
        return x  # exact pass-through, same as the PyTorch module

    if padding == "corner":
        top, bottom = 0, pad_h
        left, right = 0, pad_w
    else:  # "same"
        top, bottom = pad_h // 2, pad_h - pad_h // 2
        left, right = pad_w // 2, pad_w - pad_w // 2

    out_h = in_h + pad_h
    out_w = in_w + pad_w

    # Collapse (N, C) -> one plane axis and batch P planes per grid step.
    nc = n * c
    itemsize = jnp.dtype(x.dtype).itemsize
    in_tile = _tiled_plane_bytes(in_h, in_w, itemsize)
    out_tile = _tiled_plane_bytes(out_h, out_w, itemsize)
    vmem_budget = 8 * 1024 * 1024          # double-buffered in+out stays here
    per_plane = 2 * (in_tile + out_tile)   # x2 for BlockSpec double buffering
    p_planes = max(1, min(nc, vmem_budget // max(per_plane, 1)))
    grid = (pl.cdiv(nc, p_planes),)

    x_flat = x.reshape(nc, in_h, in_w)

    kernel = partial(_pad_kernel, pads=((0, 0), (top, bottom), (left, right)))

    cost = pl.CostEstimate(
        flops=0,
        transcendentals=0,
        bytes_accessed=nc * (in_h * in_w + out_h * out_w) * itemsize,
    )

    out_flat = pl.pallas_call(
        kernel,
        out_shape=jax.ShapeDtypeStruct((nc, out_h, out_w), x.dtype),
        grid_spec=pltpu.PrefetchScalarGridSpec(
            num_scalar_prefetch=0,
            grid=grid,
            in_specs=[
                pl.BlockSpec((p_planes, in_h, in_w), lambda i: (i, 0, 0)),
            ],
            out_specs=pl.BlockSpec((p_planes, out_h, out_w),
                                   lambda i: (i, 0, 0)),
        ),
        compiler_params=pltpu.CompilerParams(
            dimension_semantics=("parallel",),
            vmem_limit_bytes=32 * 1024 * 1024,
        ),
        cost_estimate=cost,
    )(x_flat)

    return out_flat.reshape(n, c, out_h, out_w)


def _reference(x, kernel_size, stride, dilation, padding):
    kernel_size = _to_2tuple(kernel_size)
    stride = _to_2tuple(stride)
    dilation = _to_2tuple(dilation)
    n, c, in_h, in_w = x.shape
    pad_h, pad_w = _get_pad_shape((in_h, in_w), kernel_size, stride, dilation)
    if pad_h == 0 and pad_w == 0:
        return x
    if padding == "corner":
        pads = ((0, 0), (0, 0), (0, pad_h), (0, pad_w))
    else:
        pads = ((0, 0), (0, 0),
                (pad_h // 2, pad_h - pad_h // 2),
                (pad_w // 2, pad_w - pad_w // 2))
    return jnp.pad(x, pads)


if __name__ == "__main__":
    key = jax.random.PRNGKey(0)
    # Matches the docstring example scaled down: kernel=stride=16, odd spatial.
    x = jax.random.normal(key, (2, 4, 15, 17), dtype=jnp.float32)

    # "corner" mode (pad bottom/right only)
    out_corner = adaptive_padding(x, kernel_size=16, stride=16, dilation=1,
                                  padding="corner")
    out_corner = jax.block_until_ready(out_corner)
    ref_corner = _reference(x, 16, 16, 1, "corner")
    assert out_corner.shape == (2, 4, 16, 32), out_corner.shape
    assert jnp.allclose(out_corner, ref_corner)

    # "same" mode (nonzero top/left pad; exercises the single full-tile store)
    out_same = adaptive_padding(x, kernel_size=16, stride=16, dilation=1,
                                padding="same")
    out_same = jax.block_until_ready(out_same)
    ref_same = _reference(x, 16, 16, 1, "same")
    assert out_same.shape == (2, 4, 16, 32), out_same.shape
    assert jnp.allclose(out_same, ref_same)

    # No-pad case (already aligned): exact pass-through
    x2 = jax.random.normal(jax.random.PRNGKey(1), (2, 4, 16, 32), jnp.float32)
    out_nopad = jax.block_until_ready(
        adaptive_padding(x2, kernel_size=16, stride=16, dilation=1,
                         padding="corner"))
    assert out_nopad.shape == x2.shape
    assert jnp.allclose(out_nopad, x2)

    # Height-only pad (pad_w == 0) to cover a static-pad edge case.
    x3 = jax.random.normal(jax.random.PRNGKey(2), (2, 4, 15, 32), jnp.float32)
    out_h_only = jax.block_until_ready(
        adaptive_padding(x3, kernel_size=16, stride=16, dilation=1,
                         padding="same"))
    assert out_h_only.shape == (2, 4, 16, 32)
    assert jnp.allclose(out_h_only, _reference(x3, 16, 16, 1, "same"))

    print("KERNEL_OK")
</pallas_src>

<mosaic_0001>
module attributes {stable_mosaic.version = 11 : i64} {
  func.func @_pad_kernel(%arg0: i32, %arg1: memref<8x15x17xf32, #tpu.memory_space<vmem>>, %arg2: memref<8x16x32xf32, #tpu.memory_space<vmem>>) attributes {dimension_semantics = [#tpu.dimension_semantics<parallel>], iteration_bounds = array<i64: 1>, scalar_prefetch = 0 : i64, scratch_operands = 0 : i64, tpu.core_type = #tpu.core_type<tc>, window_params = [{transform_indices = @transform_0, window_bounds = array<i64: 8, 15, 17>}, {transform_indices = @transform_1, window_bounds = array<i64: 8, 16, 32>}]} {
    %c0 = arith.constant 0 : index
    %c0_0 = arith.constant 0 : index
    %c0_1 = arith.constant 0 : index
    %0 = vector.load %arg1[%c0, %c0_0, %c0_1] : memref<8x15x17xf32, #tpu.memory_space<vmem>>, vector<8x15x17xf32>
    %c0_i32 = arith.constant 0 : i32
    %1 = arith.sitofp %c0_i32 : i32 to f32
    %2 = vector.broadcast %1 : f32 to vector<8x1x17xf32>
    %3 = tpu.concatenate %0, %2 in 1 : vector<8x15x17xf32>, vector<8x1x17xf32> -> vector<8x16x17xf32>
    %4 = vector.broadcast %1 : f32 to vector<8x16x15xf32>
    %5 = tpu.concatenate %3, %4 in 2 : vector<8x16x17xf32>, vector<8x16x15xf32> -> vector<8x16x32xf32>
    %c0_2 = arith.constant 0 : index
    %c0_3 = arith.constant 0 : index
    %c0_4 = arith.constant 0 : index
    %6 = vector.load %arg2[%c0_2, %c0_3, %c0_4] : memref<8x16x32xf32, #tpu.memory_space<vmem>>, vector<8x16x32xf32>
    tpu.vector_store %arg2[%c0_2, %c0_3, %c0_4], %5 {strides = array<i32>} : memref<8x16x32xf32, #tpu.memory_space<vmem>>, vector<8x16x32xf32>,
    return
  }
  func.func @transform_0(%arg0: i32) -> (i32, i32, i32) {
    %c0_i32 = arith.constant 0 : i32
    %c0_i32_0 = arith.constant 0 : i32
    %c0_i32_1 = arith.constant 0 : i32
    return %arg0, %c0_i32, %c0_i32_0 : i32, i32, i32
  }
  func.func @transform_1(%arg0: i32) -> (i32, i32, i32) {
    %c0_i32 = arith.constant 0 : i32
    %c0_i32_0 = arith.constant 0 : i32
    %c0_i32_1 = arith.constant 0 : i32
    return %arg0, %c0_i32, %c0_i32_0 : i32, i32, i32
  }
}

</mosaic_0001>

<bundles_post_ra>
// kernel: tpu_custom_call.1
= control target key start
LH: loop header
LB: loop body
LE: loop exit
PB: predicated region body
PF: predicated region fallthrough
CT: control target
= control target key end

     0   :  { %vm34_vm0 = vcmask 138240   ;;  %vm51_vm1 = vcmask 261120   ;;  %vm25_vm2 = vcmask 1046528   ;;  %s213_s0 = inlined_call_operand.vmem [shape: f32[8,15,17], index: 0, kind: input, shape index: {}]   ;;  %s214_s1 = inlined_call_operand.hbm [shape: f32[8,16,32], index: 1, kind: output, shape index: {}]  }
   0x1   :  { %v9_v0 = vld [vmem:[%s213_s0] sm:$0xff]  ;;  %v10_v1 = vld [vmem:[%s213_s0 + $0x8] sm:$0x7f]  ;;  %v11_v4 = vld [vmem:[%s213_s0 + $0x10] sm:$0xff] }
   0x2   :  { %v35_v2 = vsel %vm34_vm0, %v9_v0, 0.0  ;;  %v26_v3 = vsel %vm25_vm2, %v10_v1, 0.0  ;;  %v12_v5 = vld [vmem:[%s213_s0 + $0x18] sm:$0x7f]  ;;  %v13_v6 = vld [vmem:[%s213_s0 + $0x20] sm:$0xff]  ;;  %v37_v8 = vsel %vm34_vm0, %v11_v4, 0.0 }
   0x3   :  { %52 = vst.msk [vmem:[#allocation2] sm:$0xff] %vm51_vm1, %v35_v2  ;;  %v36_v7 = vsel %vm34_vm0, %v26_v3, 0.0  ;;  %v27_v9 = vsel %vm25_vm2, %v12_v5, 0.0  ;;  %v39_v10 = vsel %vm34_vm0, %v13_v6, 0.0  ;;  %v14_v11 = vld [vmem:[%s213_s0 + $0x28] sm:$0x7f] }
   0x4   :  { %53 = vst.msk [vmem:[#allocation2 + $0x8] sm:$0xff] %vm51_vm1, %v36_v7  ;;  %54 = vst.msk [vmem:[#allocation2 + $0x10] sm:$0xff] %vm51_vm1, %v37_v8  ;;  %v38_v12 = vsel %vm34_vm0, %v27_v9, 0.0  ;;  %v28_v13 = vsel %vm25_vm2, %v14_v11, 0.0  ;;  %v15_v14 = vld [vmem:[%s213_s0 + $0x30] sm:$0xff]  ;;  %v17_v16 = vld [vmem:[%s213_s0 + $0x40] sm:$0xff] }
   0x5   :  { %56 = vst.msk [vmem:[#allocation2 + $0x20] sm:$0xff] %vm51_vm1, %v39_v10  ;;  %v16_v15 = vld [vmem:[%s213_s0 + $0x38] sm:$0x7f]  ;;  %55 = vst.msk [vmem:[#allocation2 + $0x18] sm:$0xff] %vm51_vm1, %v38_v12  ;;  %v40_v17 = vsel %vm34_vm0, %v28_v13, 0.0  ;;  %v41_v18 = vsel %vm34_vm0, %v15_v14, 0.0 }
   0x6   :  { %v29_v19 = vsel %vm25_vm2, %v16_v15, 0.0  ;;  %v43_v20 = vsel %vm34_vm0, %v17_v16, 0.0  ;;  %v18_v21 = vld [vmem:[%s213_s0 + $0x48] sm:$0x7f]  ;;  %57 = vst.msk [vmem:[#allocation2 + $0x28] sm:$0xff] %vm51_vm1, %v40_v17  ;;  %58 = vst.msk [vmem:[#allocation2 + $0x30] sm:$0xff] %vm51_vm1, %v41_v18 }
   0x7   :  { %v42_v22 = vsel %vm34_vm0, %v29_v19, 0.0  ;;  %60 = vst.msk [vmem:[#allocation2 + $0x40] sm:$0xff] %vm51_vm1, %v43_v20  ;;  %v30_v23 = vsel %vm25_vm2, %v18_v21, 0.0  ;;  %v19_v24 = vld [vmem:[%s213_s0 + $0x50] sm:$0xff]  ;;  %v20_v25 = vld [vmem:[%s213_s0 + $0x58] sm:$0x7f] }
   0x8   :  { %v21_v26 = vld [vmem:[%s213_s0 + $0x60] sm:$0xff]  ;;  %59 = vst.msk [vmem:[#allocation2 + $0x38] sm:$0xff] %vm51_vm1, %v42_v22  ;;  %v44_v27 = vsel %vm34_vm0, %v30_v23, 0.0  ;;  %v45_v28 = vsel %vm34_vm0, %v19_v24, 0.0  ;;  %v31_v29 = vsel %vm25_vm2, %v20_v25, 0.0  ;;  %v23_v34 = vld [vmem:[%s213_s0 + $0x70] sm:$0xff] }
   0x9   :  { %v47_v30 = vsel %vm34_vm0, %v21_v26, 0.0  ;;  %v22_v31 = vld [vmem:[%s213_s0 + $0x68] sm:$0x7f]  ;;  %61 = vst.msk [vmem:[#allocation2 + $0x48] sm:$0xff] %vm51_vm1, %v44_v27  ;;  %62 = vst.msk [vmem:[#allocation2 + $0x50] sm:$0xff] %vm51_vm1, %v45_v28  ;;  %v46_v32 = vsel %vm34_vm0, %v31_v29, 0.0 }
   0xa   :  { %64 = vst.msk [vmem:[#allocation2 + $0x60] sm:$0xff] %vm51_vm1, %v47_v30  ;;  %v32_v33 = vsel %vm25_vm2, %v22_v31, 0.0  ;;  %v24_v35 = vld [vmem:[%s213_s0 + $0x78] sm:$0x7f]  ;;  %63 = vst.msk [vmem:[#allocation2 + $0x58] sm:$0xff] %vm51_vm1, %v46_v32  ;;  %v49_v37 = vsel %vm34_vm0, %v23_v34, 0.0 }
   0xb   :  { %v48_v36 = vsel %vm34_vm0, %v32_v33, 0.0  ;;  %v33_v38 = vsel %vm25_vm2, %v24_v35, 0.0 }
   0xc   :  { %6 = vsyncpa [#allocation3], 0  ;;  %s109_s9 = smov [#allocation2]   ;;  %65 = vst.msk [vmem:[#allocation2 + $0x68] sm:$0xff] %vm51_vm1, %v48_v36  ;;  %v50_v39 = vsel %vm34_vm0, %v33_v38, 0.0 }
   0xd   :  { %s73_s10 = sshll.u32 %s109_s9, 4  ;;  %66 = vst.msk [vmem:[#allocation2 + $0x70] sm:$0xff] %vm51_vm1, %v49_v37  ;;  %67 = vst.msk [vmem:[#allocation2 + $0x78] sm:$0xff] %vm51_vm1, %v50_v39  ;;  %s74_s10 = int_to_ptr.vmem [resolvable:$true] %s73_s10 }
   0xe   :  { %s87_s0 = scalar_lea.vmem %s74_s10, 2048  ;;  %p92_p1 = scmp.lt.s32.totalorder %s74_s10, %s74_s10 }
   0xf   :  { %p88_p0 = scmp.ne.s32.totalorder %s74_s10, %s87_s0  ;;  %p93_p2 = scmp.lt.s32.totalorder %s87_s0, %s87_s0 }
  0x11   :  { %p94_p3 = por %p93_p2, %p92_p1 }
  0x13   :  { %p95_p4 = pnand %p94_p3, %p88_p0 }
  0x15   :  { %98 = shalt.err (!%p95_p4)
}
  0x16   :  { %s110_s11 = smov 128   ;;  %s111_s12 = smov 8  }
  0x17   :  { %79 = dma.vmem_to_hbm [thread:$0]  %s74_s10, 2048, %s214_s1, [#allocation3], %s110_s11, %s110_s11, %s111_s12  }
  0x18   :  { %107 = dma.done.wait [#allocation3], 2048  }
  0x19   :  { %108 = vsyncadd [#allocation3], 4294965248 }
  0x1a   :  { %83 = vsyncpa [#allocation3], 1 }

</bundles_post_ra>
